<compile_context>
chip_gen: v6e
topology: v6e:2x2x1
jax: 0.10.0
libtpu: 0.0.40
codegen_flags: <defaults>
</compile_context>

<pallas_src>
import jax
import jax.numpy as jnp
from jax import lax
from jax.experimental import pallas as pl
from jax.experimental.pallas import tpu as pltpu

_EPS = 1e-8  # matches torch.nn.CosineSimilarity eps (applied per row norm here)
_VMEM_BUDGET = 48 * 1024 * 1024  # safe on v7x (64 MiB physical); fine on v5e/v6e


def _round_up(x: int, m: int) -> int:
    return ((x + m - 1) // m) * m


def _make_kernel(n: int, block: int, margin: float, mask_blk: int):
    def kernel(ib_ref, jb_ref, a_ref, bt_ref, li_ref, lj_ref, out_ref):
        p = pl.program_id(0)
        i_blk = ib_ref[p]
        j_blk = jb_ref[p]

        # MXU: cosine-similarity tile (rows pre-normalized, RHS pre-transposed
        # to native (K, N) layout); bf16 in, f32 accumulation out.
        s = lax.dot_general(
            a_ref[...], bt_ref[...],
            dimension_numbers=(((1,), (0,)), ((), ())),
            preferred_element_type=jnp.float32,
        )                                                   # (block, block) f32

        # In-kernel label-equality mask (no N^2 HBM mask) + fused hinge.
        same = li_ref[...] == lj_ref[...]                   # (block,1) vs (1,block)
        per_pair = jnp.maximum(jnp.where(same, 1.0 - s, s - margin), 0.0)

        # Interior off-diagonal, non-padded tiles: every element is a valid
        # (i < j) pair -> sublane-only reduce into a lane-dense partial row.
        out_ref[...] = jnp.sum(per_pair, axis=0, keepdims=True).reshape(1, 1, block)

        # Only diagonal tiles and tiles touching the padded tail pay for the
        # iota-based triangle/validity mask.
        @pl.when((i_blk == j_blk) | (j_blk == mask_blk))
        def _masked():
            gi = i_blk * block + lax.broadcasted_iota(jnp.int32, (block, block), 0)
            gj = j_blk * block + lax.broadcasted_iota(jnp.int32, (block, block), 1)
            keep = (gj > gi) & (gj < n)        # (gj<n) & (gj>gi) implies gi<n
            out_ref[...] = jnp.sum(jnp.where(keep, per_pair, 0.0),
                                   axis=0, keepdims=True).reshape(1, 1, block)

    return kernel


def pseudo_triplet_loss(embeddings: jax.Array, labels: jax.Array,
                        margin: float = 0.1, block_size: int = 512) -> jax.Array:
    """JAX/Pallas port of PseudoTripletLoss.forward.

    embeddings: (N, D) float32
    labels:     (N,)   integer
    returns:    (1,)   float32
    """
    n, d = embeddings.shape
    x = embeddings.astype(jnp.float32)

    # Hoisted row L2 normalization: O(N*D), done once so tiles are MXU-only.
    norm = jnp.sqrt(jnp.sum(x * x, axis=1, keepdims=True))
    xn = x / jnp.maximum(norm, _EPS)

    # Zero-pad D to a multiple of 128 (zero columns leave the Gram unchanged).
    d_pad = _round_up(max(d, 128), 128)
    if d_pad > d:
        xn = jnp.pad(xn, ((0, 0), (0, d_pad - d)))

    # Lane-dense square tile: multiple of 128, default 512, shrunk if the
    # double-buffered slabs would blow the per-generation VMEM budget.
    block = _round_up(min(max(int(block_size), 128), _round_up(n, 128)), 128)

    def _step_vmem(blk: int) -> int:
        a = 2 * blk * d_pad * 2          # double-buffered bf16 row slab
        bt = 2 * d_pad * blk * 2         # double-buffered bf16 pre-transposed col slab
        lbl = 2 * 2 * blk * 4            # double-buffered label slabs
        out = 2 * blk * 4                # partial-sum output row
        gram = 2 * blk * blk * 4         # s / per_pair f32 intermediates
        return a + bt + lbl + out + gram

    while block > 128 and _step_vmem(block) > _VMEM_BUDGET:
        block -= 128

    n_pad = _round_up(n, block)
    nb = n_pad // block

    labels_i32 = labels.astype(jnp.int32)
    if n_pad > n:
        xn = jnp.pad(xn, ((0, n_pad - n), (0, 0)))
        labels_i32 = jnp.pad(labels_i32, (0, n_pad - n), constant_values=-1)

    # bf16 rows for the MXU; accumulation stays f32.
    # TODO(synk): use an f32 (multi-pass) Gram path if exact parity with
    # PyTorch f32 CosineSimilarity is required; bf16 gives ~3 digits.
    xn_bf = xn.astype(jnp.bfloat16)
    xn_bf_t = xn_bf.T                     # (d_pad, n_pad): native (K, N) RHS layout

    lrow = labels_i32.reshape(n_pad, 1)
    lcol = labels_i32.reshape(1, n_pad)

    # Static upper-triangular block schedule (Gram symmetry -> ~2x fewer tiles),
    # i-major so the resident row slab is reused across consecutive steps.
    pairs = [(i, j) for i in range(nb) for j in range(i, nb)]
    i_blocks = jnp.asarray([p[0] for p in pairs], dtype=jnp.int32)
    j_blocks = jnp.asarray([p[1] for p in pairs], dtype=jnp.int32)
    num_steps = len(pairs)

    mask_blk = (nb - 1) if n_pad > n else -1
    kernel = _make_kernel(n, block, float(margin), mask_blk)

    grid_spec = pltpu.PrefetchScalarGridSpec(
        num_scalar_prefetch=2,
        grid=(num_steps,),
        in_specs=[
            pl.BlockSpec((block, d_pad), lambda p, ib, jb: (ib[p], 0)),   # rows i
            pl.BlockSpec((d_pad, block), lambda p, ib, jb: (0, jb[p])),   # cols j (pre-T)
            pl.BlockSpec((block, 1), lambda p, ib, jb: (ib[p], 0)),       # labels i
            pl.BlockSpec((1, block), lambda p, ib, jb: (0, jb[p])),       # labels j
        ],
        out_specs=pl.BlockSpec((1, 1, block), lambda p, ib, jb: (p, 0, 0)),
    )

    vmem_limit = int(min(_VMEM_BUDGET,
                         max(32 * 1024 * 1024, int(_step_vmem(block) * 1.5))))
    # TODO(synk): raise the VMEM budget to ~96 MiB on v5e/v6e (128 MiB physical)
    # via pltpu.get_tpu_info() once per-generation detection is wired in.

    partials = pl.pallas_call(
        kernel,
        out_shape=jax.ShapeDtypeStruct((num_steps, 1, block), jnp.float32),
        grid_spec=grid_spec,
        compiler_params=pltpu.CompilerParams(
            dimension_semantics=("parallel",),    # no carried state -> megacore-safe
            vmem_limit_bytes=vmem_limit,
        ),
    )(i_blocks, j_blocks, xn_bf, xn_bf_t, lrow, lcol)

    inv_denom = 1.0 / float(n * (n - 1))
    return (jnp.sum(partials, dtype=jnp.float32) * inv_denom).reshape((1,))


def _reference_loss(embeddings, labels, margin=0.1):
    """Vectorized plain-JAX mirror of the PyTorch double loop (f32)."""
    x = embeddings.astype(jnp.float32)
    n = x.shape[0]
    norm = jnp.maximum(jnp.sqrt(jnp.sum(x * x, axis=1, keepdims=True)), _EPS)
    xn = x / norm
    s = xn @ xn.T
    same = labels[:, None] == labels[None, :]
    per = jnp.where(same, jnp.maximum(1.0 - s, 0.0), jnp.maximum(s - margin, 0.0))
    tri = jnp.triu(jnp.ones((n, n), dtype=bool), k=1)
    total = jnp.sum(jnp.where(tri, per, 0.0))
    return (total / (n * (n - 1))).reshape((1,))


if __name__ == "__main__":
    key = jax.random.PRNGKey(0)
    k1, k2, k3, k4 = jax.random.split(key, 4)

    # Small case (single padded tile, default block).
    n1, d1 = 48, 32
    emb1 = jax.random.normal(k1, (n1, d1), dtype=jnp.float32)
    lab1 = jax.random.randint(k2, (n1,), 0, 4, dtype=jnp.int32)
    out1 = jax.block_until_ready(pseudo_triplet_loss(emb1, lab1, margin=0.1))
    ref1 = _reference_loss(emb1, lab1, margin=0.1)
    assert out1.shape == (1,)
    assert jnp.allclose(out1, ref1, rtol=2e-2, atol=2e-3), (out1, ref1)

    # Multi-tile path: 3x3 row blocks -> 6 upper-triangular block-pair steps,
    # exercising interior (unmasked), diagonal and padded-edge tiles.
    n2, d2 = 300, 64
    emb2 = jax.random.normal(k3, (n2, d2), dtype=jnp.float32)
    lab2 = jax.random.randint(k4, (n2,), 0, 8, dtype=jnp.int32)
    out2 = jax.block_until_ready(
        pseudo_triplet_loss(emb2, lab2, margin=0.1, block_size=128))
    ref2 = _reference_loss(emb2, lab2, margin=0.1)
    assert out2.shape == (1,)
    assert jnp.allclose(out2, ref2, rtol=2e-2, atol=2e-3), (out2, ref2)

    print("KERNEL_OK")
</pallas_src>

<mosaic_0001>
module attributes {stable_mosaic.version = 11 : i64} {
  func.func @kernel(%arg0: i32, %arg1: memref<1xi32, #tpu.memory_space<smem>>, %arg2: memref<1xi32, #tpu.memory_space<smem>>, %arg3: memref<128x128xbf16, #tpu.memory_space<vmem>>, %arg4: memref<128x128xbf16, #tpu.memory_space<vmem>>, %arg5: memref<128x1xi32, #tpu.memory_space<vmem>>, %arg6: memref<1x128xi32, #tpu.memory_space<vmem>>, %arg7: memref<1x1x128xf32, #tpu.memory_space<vmem>>) attributes {dimension_semantics = [#tpu.dimension_semantics<parallel>], iteration_bounds = array<i64: 1>, scalar_prefetch = 2 : i64, scratch_operands = 0 : i64, tpu.core_type = #tpu.core_type<tc>, window_params = [{transform_indices = @transform_0, window_bounds = array<i64: 128, 128>}, {transform_indices = @transform_1, window_bounds = array<i64: 128, 128>}, {transform_indices = @transform_2, window_bounds = array<i64: 128, 1>}, {transform_indices = @transform_3, window_bounds = array<i64: 1, 128>}, {transform_indices = @transform_4, window_bounds = array<i64: 1, 1, 128>}]} {
    %0 = arith.index_cast %arg0 : i32 to index
    %1 = memref.load %arg1[%0] : memref<1xi32, #tpu.memory_space<smem>>
    %2 = arith.index_cast %arg0 : i32 to index
    %3 = memref.load %arg2[%2] : memref<1xi32, #tpu.memory_space<smem>>
    %c0 = arith.constant 0 : index
    %c0_0 = arith.constant 0 : index
    %4 = vector.load %arg3[%c0, %c0_0] : memref<128x128xbf16, #tpu.memory_space<vmem>>, vector<128x128xbf16>
    %c0_1 = arith.constant 0 : index
    %c0_2 = arith.constant 0 : index
    %5 = vector.load %arg4[%c0_1, %c0_2] : memref<128x128xbf16, #tpu.memory_space<vmem>>, vector<128x128xbf16>
    %cst = arith.constant dense<0.000000e+00> : vector<128x128xf32>
    %6 = tpu.matmul %4, %5, %cst {dimension_numbers = #tpu.dot_dimension_numbers<[1], [0], [0], [1], [0, 0, 1, 1], [], []>} : vector<128x128xbf16>, vector<128x128xbf16>, vector<128x128xf32> -> vector<128x128xf32>
    %c0_3 = arith.constant 0 : index
    %c0_4 = arith.constant 0 : index
    %7 = vector.load %arg5[%c0_3, %c0_4] : memref<128x1xi32, #tpu.memory_space<vmem>>, vector<128x1xi32>
    %c0_5 = arith.constant 0 : index
    %c0_6 = arith.constant 0 : index
    %8 = vector.load %arg6[%c0_5, %c0_6] : memref<1x128xi32, #tpu.memory_space<vmem>>, vector<1x128xi32>
    %9 = vector.broadcast %7 : vector<128x1xi32> to vector<128x128xi32>
    %10 = vector.broadcast %8 : vector<1x128xi32> to vector<128x128xi32>
    %11 = arith.cmpi eq, %9, %10 : vector<128x128xi32>
    %cst_7 = arith.constant 1.000000e+00 : f32
    %12 = vector.broadcast %cst_7 : f32 to vector<128x128xf32>
    %13 = arith.subf %12, %6 : vector<128x128xf32>
    %cst_8 = arith.constant 1.000000e-01 : f32
    %14 = vector.broadcast %cst_8 : f32 to vector<128x128xf32>
    %15 = arith.subf %6, %14 : vector<128x128xf32>
    %16 = arith.select %11, %13, %15 : vector<128x128xi1>, vector<128x128xf32>
    %cst_9 = arith.constant 0.000000e+00 : f32
    %17 = vector.broadcast %cst_9 : f32 to vector<128x128xf32>
    %18 = arith.maximumf %16, %17 : vector<128x128xf32>
    %cst_10 = arith.constant dense<0.000000e+00> : vector<128xf32>
    %19 = vector.multi_reduction <add>, %18, %cst_10 [0] : vector<128x128xf32> to vector<128xf32>
    %20 = vector.shape_cast %19 : vector<128xf32> to vector<1x128xf32>
    %21 = vector.shape_cast %20 : vector<1x128xf32> to vector<1x1x128xf32>
    %c0_11 = arith.constant 0 : index
    %c0_12 = arith.constant 0 : index
    %c0_13 = arith.constant 0 : index
    %22 = vector.load %arg7[%c0_11, %c0_12, %c0_13] : memref<1x1x128xf32, #tpu.memory_space<vmem>>, vector<1x1x128xf32>
    tpu.vector_store %arg7[%c0_11, %c0_12, %c0_13], %21 {strides = array<i32>} : memref<1x1x128xf32, #tpu.memory_space<vmem>>, vector<1x1x128xf32>,
    %23 = arith.cmpi eq, %1, %3 : i32
    %c0_i32 = arith.constant 0 : i32
    %24 = arith.cmpi eq, %3, %c0_i32 : i32
    %25 = arith.ori %23, %24 : i1
    %26 = arith.extui %25 : i1 to i32
    %c0_i32_14 = arith.constant 0 : i32
    %27 = arith.cmpi ne, %26, %c0_i32_14 : i32
    scf.if %27 {
      %c128_i32 = arith.constant 128 : i32
      %28 = arith.muli %1, %c128_i32 : i32
      %29 = tpu.iota {dimensions = array<i32: 0>} : vector<128x128xi32>
      %30 = vector.broadcast %28 : i32 to vector<128x128xi32>
      %31 = arith.addi %30, %29 : vector<128x128xi32>
      %c128_i32_15 = arith.constant 128 : i32
      %32 = arith.muli %3, %c128_i32_15 : i32
      %33 = tpu.iota {dimensions = array<i32: 1>} : vector<128x128xi32>
      %34 = vector.broadcast %32 : i32 to vector<128x128xi32>
      %35 = arith.addi %34, %33 : vector<128x128xi32>
      %36 = arith.cmpi sgt, %35, %31 : vector<128x128xi32>
      %c48_i32 = arith.constant 48 : i32
      %37 = vector.broadcast %c48_i32 : i32 to vector<128x128xi32>
      %38 = arith.cmpi slt, %35, %37 : vector<128x128xi32>
      %39 = arith.andi %36, %38 : vector<128x128xi1>
      %cst_16 = arith.constant 0.000000e+00 : f32
      %40 = vector.broadcast %cst_16 : f32 to vector<128x128xf32>
      %41 = arith.select %39, %18, %40 : vector<128x128xi1>, vector<128x128xf32>
      %cst_17 = arith.constant dense<0.000000e+00> : vector<128xf32>
      %42 = vector.multi_reduction <add>, %41, %cst_17 [0] : vector<128x128xf32> to vector<128xf32>
      %43 = vector.shape_cast %42 : vector<128xf32> to vector<1x128xf32>
      %44 = vector.shape_cast %43 : vector<1x128xf32> to vector<1x1x128xf32>
      %c0_18 = arith.constant 0 : index
      %c0_19 = arith.constant 0 : index
      %c0_20 = arith.constant 0 : index
      %45 = vector.load %arg7[%c0_18, %c0_19, %c0_20] : memref<1x1x128xf32, #tpu.memory_space<vmem>>, vector<1x1x128xf32>
      tpu.vector_store %arg7[%c0_18, %c0_19, %c0_20], %44 {strides = array<i32>} : memref<1x1x128xf32, #tpu.memory_space<vmem>>, vector<1x1x128xf32>,
    } else {
    }
    return
  }
  func.func @transform_0(%arg0: i32, %arg1: memref<1xi32, #tpu.memory_space<smem>>, %arg2: memref<1xi32, #tpu.memory_space<smem>>) -> (i32, i32) {
    %0 = arith.index_cast %arg0 : i32 to index
    %1 = memref.load %arg1[%0] : memref<1xi32, #tpu.memory_space<smem>>
    %c0_i32 = arith.constant 0 : i32
    %c0_i32_0 = arith.constant 0 : i32
    return %1, %c0_i32 : i32, i32
  }
  func.func @transform_1(%arg0: i32, %arg1: memref<1xi32, #tpu.memory_space<smem>>, %arg2: memref<1xi32, #tpu.memory_space<smem>>) -> (i32, i32) {
    %0 = arith.index_cast %arg0 : i32 to index
    %1 = memref.load %arg2[%0] : memref<1xi32, #tpu.memory_space<smem>>
    %c0_i32 = arith.constant 0 : i32
    %c0_i32_0 = arith.constant 0 : i32
    return %c0_i32, %1 : i32, i32
  }
  func.func @transform_2(%arg0: i32, %arg1: memref<1xi32, #tpu.memory_space<smem>>, %arg2: memref<1xi32, #tpu.memory_space<smem>>) -> (i32, i32) {
    %0 = arith.index_cast %arg0 : i32 to index
    %1 = memref.load %arg1[%0] : memref<1xi32, #tpu.memory_space<smem>>
    %c0_i32 = arith.constant 0 : i32
    %c0_i32_0 = arith.constant 0 : i32
    return %1, %c0_i32 : i32, i32
  }
  func.func @transform_3(%arg0: i32, %arg1: memref<1xi32, #tpu.memory_space<smem>>, %arg2: memref<1xi32, #tpu.memory_space<smem>>) -> (i32, i32) {
    %0 = arith.index_cast %arg0 : i32 to index
    %1 = memref.load %arg2[%0] : memref<1xi32, #tpu.memory_space<smem>>
    %c0_i32 = arith.constant 0 : i32
    %c0_i32_0 = arith.constant 0 : i32
    return %c0_i32, %1 : i32, i32
  }
  func.func @transform_4(%arg0: i32, %arg1: memref<1xi32, #tpu.memory_space<smem>>, %arg2: memref<1xi32, #tpu.memory_space<smem>>) -> (i32, i32, i32) {
    %c0_i32 = arith.constant 0 : i32
    %c0_i32_0 = arith.constant 0 : i32
    %c0_i32_1 = arith.constant 0 : i32
    return %arg0, %c0_i32, %c0_i32_0 : i32, i32, i32
  }
}

</mosaic_0001>

<bundles_post_ra>
// kernel: tpu_custom_call.1
= control target key start
LH: loop header
LB: loop body
LE: loop exit
PB: predicated region body
PF: predicated region fallthrough
CT: control target
= control target key end

     0   :  { %13 = vsyncpa [#allocation6], 0  ;;  %v794_v0 = vmov 0   ;;  %s1155_s0 = inlined_call_operand.<no memory space> [shape: s32[1], index: 0, kind: input, shape index: {}]   ;;  %s1156_s1 = inlined_call_operand.<no memory space> [shape: s32[1], index: 1, kind: input, shape index: {}]   ;;  %s1157_s2 = inlined_call_operand.vmem [shape: bf16[128,128], index: 2, kind: input, shape index: {}]   ;;  %s1158_s3 = inlined_call_operand.vmem [shape: bf16[128,128], index: 3, kind: input, shape index: {}]   ;;  %s1159_s4 = inlined_call_operand.vmem [shape: s32[128,1], index: 4, kind: input, shape index: {}]   ;;  %s1160_s5 = inlined_call_operand.vmem [shape: s32[1,128], index: 5, kind: input, shape index: {}]   ;;  %s1161_s6 = inlined_call_operand.hbm [shape: f32[1,1,128], index: 6, kind: output, shape index: {}]  }
   0x1   :  { %p79_p0 = scmp.lt.s32.totalorder %s1156_s1, 0  ;;  %s648_s25 = sshll.u32 %s1155_s0, 4  ;;  %754 = vset.pattern.permute.xlu0 %v794_v0  ;;  %755 = vset.pattern.permute.xlu1 %v794_v0 }
   0x2   :  { %p72_p1 = scmp.lt.s32.totalorder %s648_s25, 15  ;;  %p496_p2 = scmp.eq.s32.totalorder %s1155_s0, %s1156_s1 }
   0x3   :  { %s840_s28 = scalar_select %p79_p0, %s1156_s1, 0 }
   0x4   :  { %s1164_s25 = smov (!%p72_p1, %s648_s25), 15  ;;  %p497_p3 = scmp.eq.s32.totalorder %s1156_s1, 0 }
   0x5   :  { %s650_s29 = sshll.u32 %s840_s28, 2  ;;  %s649_s9 = sshll.u32 %s1164_s25, 2 }
   0x6   :  { %s848_s8 = scalar_lea.vmem %s1158_s3, %s650_s29  ;;  %s857_s3 = scalar_lea.vmem %s1157_s2, %s649_s9 }
   0x7   :  { %v756_v1 = vld [vmem:[%s848_s8 + $0x38] sm:$0xff]   ;;  %v757_v2 = vld [vmem:[%s848_s8 + $0x30] sm:$0xff]   ;;  %v758_v3 = vld [vmem:[%s848_s8 + $0x28] sm:$0xff]   ;;  %s652_s12 = sshll.u32 %s1164_s25, 3  ;;  %p903_p4 = por %p497_p3, %p496_p2 }
   0x8   :  { %704 = vmatprep.subr.bf16.mxu0 %v756_v1  ;;  %736 = vmatprep.subr.bf16.mxu1 %v756_v1  ;;  %v759_v4 = vld [vmem:[%s848_s8 + $0x20] sm:$0xff]   ;;  %v760_v7 = vld [vmem:[%s848_s8 + $0x18] sm:$0xff]   ;;  %s867_s14 = scalar_lea.vmem %s1159_s4, %s652_s12  ;;  %v761_v8 = vld [vmem:[%s848_s8 + $0x10] sm:$0xff]   ;;  %s95_s23 = scalar_lea.vmem %s1160_s5, %s840_s28 }
   0x9   :  { %705 = vmatpush3.bf16.msra.mxu0 %v756_v1  ;;  %744 = vmatpush3.bf16.msra.mxu1 %v756_v1  ;;  %v764_v5 = vld [vmem:[%s857_s3] sm:$0xff]   ;;  %v327_v10 = vld [vmem:[%s867_s14 + $0x10] sm:$0xff]  ;;  %v326_v11 = vld [vmem:[%s867_s14 + $0x8] sm:$0xff]  ;;  %s686_s25 = sshll.u32 (%p903_p4), %s1155_s0, 7  ;;  %s687_s28 = sshll.u32 (%p903_p4), %s1156_s1, 7 }
   0xa   :  { %706 = vmatprep.subr.bf16.mxu0 %v757_v2  ;;  %737 = vmatprep.subr.bf16.mxu1 %v757_v2  ;;  %v765_v6 = vld [vmem:[%s857_s3 + $0x20] sm:$0xff]   ;;  %v328_v12 = vld [vmem:[%s867_s14 + $0x18] sm:$0xff]  ;;  %v762_v13 = vld [vmem:[%s848_s8 + $0x8] sm:$0xff]  }
   0xb   :  { %720 = vmatprep.mubr.bf16.mxu0 %v764_v5  ;;  %728 = vmatprep.mubr.bf16.mxu1 %v765_v6  ;;  %v325_v9 = vld [vmem:[%s867_s14] sm:$0xff]  ;;  %v330_v15 = vld [vmem:[%s867_s14 + $0x28] sm:$0xff]  ;;  %v331_v17 = vld [vmem:[%s867_s14 + $0x30] sm:$0xff] }
   0xc   :  { %343 = vperm.xlu0 %754, %v325_v9   ;;  %349 = vperm.xlu1 %755, %v327_v10   ;;  %v329_v14 = vld [vmem:[%s867_s14 + $0x20] sm:$0xff]  ;;  %v332_v18 = vld [vmem:[%s867_s14 + $0x38] sm:$0xff]  ;;  %v766_v19 = vld [vmem:[%s857_s3 + $0x8] sm:$0xff]  }
   0xd   :  { %707 = vmatpush3.bf16.msra.mxu0 %v757_v2  ;;  %745 = vmatpush3.bf16.msra.mxu1 %v757_v2  ;;  %v763_v16 = vld [vmem:[%s848_s8] sm:$0xff]   ;;  %v767_v20 = vld [vmem:[%s857_s3 + $0x28] sm:$0xff]   ;;  %v768_v23 = vld [vmem:[%s857_s3 + $0x10] sm:$0xff]  }
   0xe   :  { %708 = vmatprep.subr.bf16.mxu0 %v758_v3  ;;  %738 = vmatprep.subr.bf16.mxu1 %v758_v3  ;;  %v333_v21 = vld [vmem:[%s867_s14 + $0x40] sm:$0xff]  ;;  %v334_v22 = vld [vmem:[%s867_s14 + $0x48] sm:$0xff]  ;;  %v769_v24 = vld [vmem:[%s857_s3 + $0x30] sm:$0xff]  }
   0xf   :  { %v335_v25 = vld [vmem:[%s867_s14 + $0x50] sm:$0xff]  ;;  %v336_v26 = vld [vmem:[%s867_s14 + $0x58] sm:$0xff]  ;;  %v337_v29 = vld [vmem:[%s867_s14 + $0x60] sm:$0xff] }
  0x10   :  { %346 = vperm.xlu0 %754, %v326_v11   ;;  %352 = vperm.xlu1 %755, %v328_v12   ;;  %v770_v27 = vld [vmem:[%s857_s3 + $0x18] sm:$0xff]   ;;  %v338_v30 = vld [vmem:[%s867_s14 + $0x68] sm:$0xff]  ;;  %v339_v31 = vld [vmem:[%s867_s14 + $0x70] sm:$0xff] }
  0x11   :  { %709 = vmatpush3.bf16.msra.mxu0 %v758_v3  ;;  %746 = vmatpush3.bf16.msra.mxu1 %v758_v3  ;;  %v771_v28 = vld [vmem:[%s857_s3 + $0x38] sm:$0xff]   ;;  %v913_v41 = vld [vmem:[%s95_s23] ss:$0 sm:$0xff] }
  0x12   :  { %710 = vmatprep.subr.bf16.mxu0 %v759_v4  ;;  %739 = vmatprep.subr.bf16.mxu1 %v759_v4  ;;  %v340_v32 = vld [vmem:[%s867_s14 + $0x78] sm:$0xff] }
  0x14   :  { %355 = vperm.xlu0 %754, %v329_v14   ;;  %358 = vperm.xlu1 %755, %v330_v15  }
  0x15   :  { %711 = vmatpush3.bf16.msra.mxu0 %v759_v4  ;;  %747 = vmatpush3.bf16.msra.mxu1 %v759_v4 }
  0x16   :  { %712 = vmatprep.subr.bf16.mxu0 %v760_v7  ;;  %740 = vmatprep.subr.bf16.mxu1 %v760_v7 }
  0x18   :  { %361 = vperm.xlu0 %754, %v331_v17   ;;  %364 = vperm.xlu1 %755, %v332_v18  }
  0x19   :  { %713 = vmatpush3.bf16.msra.mxu0 %v760_v7  ;;  %748 = vmatpush3.bf16.msra.mxu1 %v760_v7 }
  0x1a   :  { %714 = vmatprep.subr.bf16.mxu0 %v761_v8  ;;  %741 = vmatprep.subr.bf16.mxu1 %v761_v8 }
  0x1c   :  { %367 = vperm.xlu0 %754, %v333_v21   ;;  %370 = vperm.xlu1 %755, %v334_v22  }
  0x1d   :  { %715 = vmatpush3.bf16.msra.mxu0 %v761_v8  ;;  %749 = vmatpush3.bf16.msra.mxu1 %v761_v8 }
  0x1e   :  { %716 = vmatprep.subr.bf16.mxu0 %v762_v13  ;;  %742 = vmatprep.subr.bf16.mxu1 %v762_v13 }
  0x20   :  { %373 = vperm.xlu0 %754, %v335_v25   ;;  %376 = vperm.xlu1 %755, %v336_v26  }
  0x21   :  { %717 = vmatpush3.bf16.msra.mxu0 %v762_v13  ;;  %750 = vmatpush3.bf16.msra.mxu1 %v762_v13 }
  0x22   :  { %718 = vmatprep.subr.bf16.mxu0 %v763_v16  ;;  %743 = vmatprep.subr.bf16.mxu1 %v763_v16 }
  0x24   :  { %379 = vperm.xlu0 %754, %v337_v29   ;;  %382 = vperm.xlu1 %755, %v338_v30  }
  0x25   :  { %719 = vmatpush3.bf16.msra.mxu0 %v763_v16  ;;  %751 = vmatpush3.bf16.msra.mxu1 %v763_v16 }
  0x28   :  { %721 = vmatmul.mubr.bf16.vlgmr.msra.gmra.mxu0 %v766_v19  ;;  %729 = vmatmul.mubr.bf16.vlgmr.msra.gmra.mxu1 %v767_v20 }
  0x29   :  { %724 = vmatprep.mubr.bf16.mxu0 %v768_v23  ;;  %732 = vmatprep.mubr.bf16.mxu1 %v769_v24 }
  0x2a   :  { %385 = vperm.xlu0 %754, %v339_v31   ;;  %388 = vperm.xlu1 %755, %v340_v32  }
  0x30   :  { %725 = vmatmul.mubr.bf16.gmra.mxu0 %v770_v27  ;;  %733 = vmatmul.mubr.bf16.gmra.mxu1 %v771_v28 }
  0x87   :  { %v344_v33 = vpop.permute.xlu0 %343  ;;  %v350_v34 = vpop.permute.xlu1 %349 }
  0x88   :  { %vm394_vm0 = vcmp.eq.s32.totalorder %v344_v33, %v913_v41  ;;  %vm396_vm1 = vcmp.eq.s32.totalorder %v350_v34, %v913_v41 }
  0x8b   :  { %v347_v35 = vpop.permute.xlu0 %346  ;;  %v353_v36 = vpop.permute.xlu1 %352 }
  0x8c   :  { %vm395_vm2 = vcmp.eq.s32.totalorder %v347_v35, %v913_v41  ;;  %vm397_vm3 = vcmp.eq.s32.totalorder %v353_v36, %v913_v41 }
  0x8f   :  { %v356_v37 = vpop.permute.xlu0 %355  ;;  %v359_v40 = vpop.permute.xlu1 %358 }
  0x90   :  { %vm398_vm4 = vcmp.eq.s32.totalorder %v356_v37, %v913_v41  ;;  %vm399_vm5 = vcmp.eq.s32.totalorder %v359_v40, %v913_v41 }
  0x93   :  { %v362_v48 = vpop.permute.xlu0 %361  ;;  %v365_v53 = vpop.permute.xlu1 %364 }
  0x94   :  { %vm400_vm6 = vcmp.eq.s32.totalorder %v362_v48, %v913_v41  ;;  %vm401_vm7 = vcmp.eq.s32.totalorder %v365_v53, %v913_v41 }
  0x97   :  { %v368_v1 = vpop.permute.xlu0 %367  ;;  %v371_v9 = vpop.permute.xlu1 %370 }
  0x98   :  { %vm402_vm8 = vcmp.eq.s32.totalorder %v368_v1, %v913_v41  ;;  %vm403_vm9 = vcmp.eq.s32.totalorder %v371_v9, %v913_v41 }
  0x9b   :  { %v374_v23 = vpop.permute.xlu0 %373  ;;  %v377_v30 = vpop.permute.xlu1 %376 }
  0x9c   :  { %vm404_vm10 = vcmp.eq.s32.totalorder %v374_v23, %v913_v41  ;;  %vm405_vm11 = vcmp.eq.s32.totalorder %v377_v30, %v913_v41 }
  0x9f   :  { %v383_v53 = vpop.permute.xlu1 %382 }
  0xa0   :  { %vm407_vm13 = vcmp.eq.s32.totalorder %v383_v53, %v913_v41 }
  0xe8   :  { %v722_v38 = vpop.f32.mrf.mxu0  ;;  %v911_v39 = vpop.f32.mrf.mxu1 }
  0xe9   :  { %v412_v49 = vsub.f32 1.0, %v722_v38  ;;  %v672_v50 = vadd.f32 -0.1, %v722_v38  ;;  %v420_v37 = vsub.f32 1.0, %v911_v39  ;;  %v680_v38 = vadd.f32 -0.1, %v911_v39 }
  0xea   :  { %v262_v42 = vpop.f32.mrf.mxu0  ;;  %v915_v43 = vpop.f32.mrf.mxu1 }
  0xeb   :  { %v410_v44 = vsub.f32 1.0, %v262_v42  ;;  %v670_v45 = vadd.f32 -0.1, %v262_v42  ;;  %v925_v60 = vsel %vm396_vm1, %v412_v49, %v672_v50  ;;  %v418_v24 = vsub.f32 1.0, %v915_v43 }
  0xec   :  { %v723_v46 = vpop.f32.mrf.mxu0  ;;  %v918_v47 = vpop.f32.mrf.mxu1  ;;  %v460_v5 = vmax.f32 %v925_v60, 0.0  ;;  %v678_v25 = vadd.f32 -0.1, %v915_v43 }
  0xed   :  { %v921_v51 = vsel %vm394_vm0, %v410_v44, %v670_v45  ;;  %v413_v54 = vsub.f32 1.0, %v723_v46  ;;  %v673_v55 = vadd.f32 -0.1, %v723_v46  ;;  %v380_v44 = vpop.permute.xlu0 %379  ;;  %v421_v45 = vsub.f32 1.0, %v918_v47 }
  0xee   :  { %v265_v52 = vpop.f32.mrf.mxu0  ;;  %v297_v58 = vpop.f32.mrf.mxu1  ;;  %v458_v62 = vmax.f32 %v921_v51, 0.0  ;;  %v970_v40 = vsel %vm402_vm8, %v418_v24, %v678_v25  ;;  %v681_v46 = vadd.f32 -0.1, %v918_v47  ;;  %vm406_vm12 = vcmp.eq.s32.totalorder %v380_v44, %v913_v41 }
  0xef   :  { %v411_v56 = vsub.f32 1.0, %v265_v52  ;;  %v671_v57 = vadd.f32 -0.1, %v265_v52  ;;  %v931_v2 = vsel %vm397_vm3, %v413_v54, %v673_v55  ;;  %v419_v31 = vsub.f32 1.0, %v297_v58 }
  0xf0   :  { %v726_v59 = vpop.f32.mrf.mxu0  ;;  %v939_v7 = vpop.f32.mrf.mxu1  ;;  %v461_v13 = vmax.f32 %v931_v2, 0.0  ;;  %v679_v32 = vadd.f32 -0.1, %v297_v58  ;;  %v466_v39 = vmax.f32 %v970_v40, 0.0  ;;  %v984_v52 = vsel %vm404_vm10, %v420_v37, %v680_v38 }
  0xf1   :  { %v927_v61 = vsel %vm395_vm2, %v411_v56, %v671_v57  ;;  %v416_v10 = vsub.f32 1.0, %v726_v59  ;;  %v676_v11 = vadd.f32 -0.1, %v726_v59  ;;  %v989_v57 = vsel %vm405_vm11, %v421_v45, %v681_v46 }
  0xf2   :  { %v459_v63 = vmax.f32 %v927_v61, 0.0  ;;  %v278_v0 = vpop.f32.mrf.mxu0  ;;  %v310_v22 = vpop.f32.mrf.mxu1  ;;  %v978_v48 = vsel %vm403_vm9, %v419_v31, %v679_v32  ;;  %v469_v9 = vmax.f32 %v989_v57, 0.0  ;;  %v503_v38 = vlaneseq (%p903_p4) }
  0xf3   :  { %v414_v3 = vsub.f32 1.0, %v278_v0  ;;  %v674_v4 = vadd.f32 -0.1, %v278_v0  ;;  %v953_v26 = vsel %vm400_vm6, %v416_v10, %v676_v11  ;;  %v422_v54 = vsub.f32 1.0, %v310_v22  ;;  %v389_v11 = vpop.permute.xlu1 %388 }
  0xf4   :  { %v474_v6 = vadd.f32 %v459_v63, %v458_v62  ;;  %v727_v8 = vpop.f32.mrf.mxu0  ;;  %v464_v34 = vmax.f32 %v953_v26, 0.0  ;;  %v735_v35 = vpop.f32.mrf.mxu1  ;;  %v682_v55 = vadd.f32 -0.1, %v310_v22  ;;  %v467_v56 = vmax.f32 %v978_v48, 0.0 }
  0xf5   :  { %v941_v12 = vsel %vm398_vm4, %v414_v3, %v674_v4  ;;  %v417_v16 = vsub.f32 1.0, %v727_v8  ;;  %v677_v17 = vadd.f32 -0.1, %v727_v8  ;;  %v468_v0 = vmax.f32 %v984_v52, 0.0  ;;  %v386_v3 = vpop.permute.xlu0 %385 }
  0xf6   :  { %v475_v14 = vadd.f32 %v474_v6, %v460_v5  ;;  %v281_v15 = vpop.f32.mrf.mxu0  ;;  %v462_v20 = vmax.f32 %v941_v12, 0.0  ;;  %v313_v50 = vpop.f32.mrf.mxu1  ;;  %v424_v4 = vsub.f32 1.0, %v939_v7  ;;  %v684_v6 = vadd.f32 -0.1, %v939_v7 }
  0xf7   :  { %v415_v18 = vsub.f32 1.0, %v281_v15  ;;  %v675_v19 = vadd.f32 -0.1, %v281_v15  ;;  %v962_v33 = vsel %vm401_vm7, %v417_v16, %v677_v17  ;;  %v423_v58 = vsub.f32 1.0, %v313_v50 }
  0xf8   :  { %v476_v21 = vadd.f32 %v475_v14, %v461_v13  ;;  %v465_v42 = vmax.f32 %v962_v33, 0.0  ;;  %v683_v59 = vadd.f32 -0.1, %v313_v50  ;;  %v997_v8 = vsel %vm406_vm12, %v422_v54, %v682_v55 }
  0xf9   :  { %v955_v27 = vsel %vm399_vm5, %v415_v18, %v675_v19  ;;  %v425_v14 = vsub.f32 1.0, %v735_v35  ;;  %v685_v15 = vadd.f32 -0.1, %v735_v35  ;;  %vm408_vm14 = vcmp.eq.s32.totalorder %v386_v3, %v913_v41 }
  0xfa   :  { %v477_v28 = vadd.f32 %v476_v21, %v462_v20  ;;  %v463_v29 = vmax.f32 %v955_v27, 0.0  ;;  %v1003_v16 = vsel %vm407_vm13, %v423_v58, %v683_v59  ;;  %v470_v17 = vmax.f32 %v997_v8, 0.0 }
  0xfb   :  { %v1009_v18 = vsel %vm408_vm14, %v424_v4, %v684_v6  ;;  %vm409_vm15 = vcmp.eq.s32.totalorder %v389_v11, %v913_v41  ;;  %v471_v19 = vmax.f32 %v1003_v16, 0.0  ;;  %v539_v44 = vand.u32 (%p903_p4), 127, %v503_v38 }
  0xfc   :  { %v478_v36 = vadd.f32 %v477_v28, %v463_v29  ;;  %v1015_v22 = vsel %vm409_vm15, %v425_v14, %v685_v15  ;;  %v472_v23 = vmax.f32 %v1009_v18, 0.0  ;;  %v1036_v46 = vstv (%p903_p4), %s686_s25 }
  0xfd   :  { %v473_v25 = vmax.f32 %v1015_v22, 0.0 }
  0xfe   :  { %v479_v43 = vadd.f32 %v478_v36, %v464_v34 }
 0x100   :  { %v480_v49 = vadd.f32 %v479_v43, %v465_v42  ;;  %v1027_v43 = vshrl.u32 (%p903_p4), %v503_v38, 7 }
 0x102   :  { %v481_v47 = vadd.f32 %v480_v49, %v466_v39  ;;  %v505_v45 = vadd.s32 (%p903_p4), 8, %v1027_v43  ;;  %v540_v49 = vstv (%p903_p4), %s687_s28  ;;  %v506_v50 = vadd.s32 (%p903_p4), 16, %v1027_v43 }
 0x103   :  { %v507_v53 = vadd.s32 (%p903_p4), 24, %v1027_v43  ;;  %v508_v54 = vadd.s32 (%p903_p4), 32, %v1027_v43  ;;  %v521_v55 = vadd.s32 (%p903_p4), %v1036_v46, %v1027_v43  ;;  %v509_v58 = vadd.s32 (%p903_p4), 40, %v1027_v43 }
 0x104   :  { %v482_v1 = vadd.f32 %v481_v47, %v467_v56  ;;  %v1043_v47 = vadd.s32 (%p903_p4), %v540_v49, %v539_v44  ;;  %v522_v59 = vadd.s32 (%p903_p4), %v1036_v46, %v505_v45  ;;  %v510_v3 = vadd.s32 (%p903_p4), 48, %v1027_v43 }
 0x105   :  { %v524_v4 = vadd.s32 (%p903_p4), %v1036_v46, %v507_v53  ;;  %v525_v6 = vadd.s32 (%p903_p4), %v1036_v46, %v508_v54  ;;  %v526_v11 = vadd.s32 (%p903_p4), %v1036_v46, %v509_v58  ;;  %v512_v14 = vadd.s32 (%p903_p4), 64, %v1027_v43 }
 0x106   :  { %v483_v10 = vadd.f32 %v482_v1, %v468_v0  ;;  %v523_v1 = vadd.s32 (%p903_p4), %v1036_v46, %v506_v50  ;;  %vm542_vm0 = vcmp.gt.s32.totalorder (%p903_p4), %v1043_v47, %v521_v55  ;;  %vm543_vm1 = vcmp.gt.s32.totalorder (%p903_p4), %v1043_v47, %v522_v59 }
 0x107   :  { %vm558_vm3 = vcmp.lt.s32.totalorder (%p903_p4), %v1043_v47, 48  ;;  %v527_v15 = vadd.s32 (%p903_p4), %v1036_v46, %v510_v3  ;;  %vm545_vm4 = vcmp.gt.s32.totalorder (%p903_p4), %v1043_v47, %v524_v4  ;;  %vm546_vm6 = vcmp.gt.s32.totalorder (%p903_p4), %v1043_v47, %v525_v6 }
 0x108   :  { %v484_v7 = vadd.f32 %v483_v10, %v469_v9  ;;  %v511_v10 = vadd.s32 (%p903_p4), 56, %v1027_v43  ;;  %vm544_vm2 = vcmp.gt.s32.totalorder (%p903_p4), %v1043_v47, %v523_v1  ;;  %vm559_vm5 = vmand (%p903_p4), %vm542_vm0, %vm558_vm3  ;;  %vm547_vm8 = vcmp.gt.s32.totalorder (%p903_p4), %v1043_v47, %v526_v11 }
 0x109   :  { %vm560_vm7 = vmand (%p903_p4), %vm543_vm1, %vm558_vm3  ;;  %vm548_vm11 = vcmp.gt.s32.totalorder (%p903_p4), %v1043_v47, %v527_v15  ;;  %v515_v60 = vadd.s32 (%p903_p4), 88, %v1027_v43  ;;  %v516_v2 = vadd.s32 (%p903_p4), 96, %v1027_v43  ;;  %v517_v12 = vadd.s32 (%p903_p4), 104, %v1027_v43 }
 0x10a   :  { %v485_v21 = vadd.f32 %v484_v7, %v470_v17  ;;  %v575_v7 = vsel (%p903_p4), %vm559_vm5, %v458_v62, 0.0  ;;  %vm561_vm9 = vmand (%p903_p4), %vm544_vm2, %vm558_vm3  ;;  %v514_v62 = vadd.s32 (%p903_p4), 80, %v1027_v43  ;;  %v518_v27 = vadd.s32 (%p903_p4), 112, %v1027_v43 }
 0x10b   :  { %vm562_vm10 = vmand (%p903_p4), %vm545_vm4, %vm558_vm3  ;;  %v519_v26 = vadd.s32 (%p903_p4), 120, %v1027_v43 }
 0x10c   :  { %v486_v24 = vadd.f32 %v485_v21, %v471_v19  ;;  %v513_v21 = vadd.s32 (%p903_p4), 72, %v1027_v43  ;;  %vm563_vm12 = vmand (%p903_p4), %vm546_vm6, %vm558_vm3  ;;  %v578_v61 = vsel (%p903_p4), %vm562_vm10, %v461_v13, 0.0  ;;  %v531_v13 = vadd.s32 (%p903_p4), %v1036_v46, %v514_v62 }
 0x10d   :  { %vm564_vm13 = vmand (%p903_p4), %vm547_vm8, %vm558_vm3  ;;  %v535_v33 = vadd.s32 (%p903_p4), %v1036_v46, %v518_v27  ;;  %v536_v53 = vadd.s32 (%p903_p4), %v1036_v46, %v519_v26 }
 0x10e   :  { %v487_v28 = vadd.f32 %v486_v24, %v472_v23  ;;  %v528_v24 = vadd.s32 (%p903_p4), %v1036_v46, %v511_v10  ;;  %vm565_vm15 = vmand (%p903_p4), %vm548_vm11, %vm558_vm3  ;;  %vm552_vm5 = vcmp.gt.s32.totalorder (%p903_p4), %v1043_v47, %v531_v13 }
 0x10f   :  { %vm569_vm8 = vmand (%p903_p4), %vm552_vm5, %vm558_vm3 }
 0x110   :  { %v488_v41 = vadd.f32 %v487_v28, %v473_v25  ;;  %v576_v28 = vsel (%p903_p4), %vm560_vm7, %v459_v63, 0.0  ;;  %vm549_vm14 = vcmp.gt.s32.totalorder (%p903_p4), %v1043_v47, %v528_v24  ;;  %v585_v40 = vsel (%p903_p4), %vm569_vm8, %v468_v0, 0.0 }
 0x111   :  { %v591_v51 = vadd.f32 (%p903_p4), %v576_v28, %v575_v7  ;;  %vm566_vm1 = vmand (%p903_p4), %vm549_vm14, %vm558_vm3 }
 0x112   :  { %v489_v30 = vrot.slane %v488_v41, 4  ;;  %v582_v44 = vsel (%p903_p4), %vm566_vm1, %v465_v42, 0.0 }
 0x114   :  { %v490_v31 = vadd.f32 %v489_v30, %v488_v41  ;;  %v577_v41 = vsel (%p903_p4), %vm561_vm9, %v460_v5, 0.0  ;;  %v529_v30 = vadd.s32 (%p903_p4), %v1036_v46, %v512_v14  ;;  %v530_v5 = vadd.s32 (%p903_p4), %v1036_v46, %v513_v21 }
 0x115   :  { %v592_v63 = vadd.f32 (%p903_p4), %v591_v51, %v577_v41 }
 0x116   :  { %v491_v32 = vrot.slane %v490_v31, 2  ;;  %vm550_vm0 = vcmp.gt.s32.totalorder (%p903_p4), %v1043_v47, %v529_v30  ;;  %vm551_vm2 = vcmp.gt.s32.totalorder (%p903_p4), %v1043_v47, %v530_v5 }
 0x117   :  { %vm567_vm4 = vmand (%p903_p4), %vm550_vm0, %vm558_vm3 }
 0x118   :  { %v492_v35 = vadd.f32 %v491_v32, %v490_v31  ;;  %v579_v31 = vsel (%p903_p4), %vm563_vm12, %v462_v20, 0.0  ;;  %v593_v32 = vadd.f32 (%p903_p4), %v592_v63, %v578_v61  ;;  %v532_v20 = vadd.s32 (%p903_p4), %v1036_v46, %v515_v60  ;;  %vm568_vm6 = vmand (%p903_p4), %vm551_vm2, %vm558_vm3 }
 0x119   :  { %v583_v49 = vsel (%p903_p4), %vm567_vm4, %v466_v39, 0.0  ;;  %v584_v42 = vsel (%p903_p4), %vm568_vm6, %v467_v56, 0.0 }
 0x11a   :  { %v493_v36 = vrot.slane %v492_v35, 1  ;;  %501 = sbr.rel (!%p903_p4) target bundleno = 321 (0x141), region = 21  ;;  %vm553_vm7 = vcmp.gt.s32.totalorder (%p903_p4), %v1043_v47, %v532_v20 }
 0x11b   :  { %vm570_vm10 = vmand (%p903_p4), %vm553_vm7, %vm558_vm3 }
 0x11c   :  { %v494_v37 = vadd.f32 %v493_v36, %v492_v35  ;;  %v580_v35 = vsel (%p903_p4), %vm564_vm13, %v463_v29, 0.0  ;;  %v594_v36 = vadd.f32 (%p903_p4), %v593_v32, %v579_v31  ;;  %v533_v29 = vadd.s32 (%p903_p4), %v1036_v46, %v516_v2 }
 0x11d   :  { %vm556_vm13 = vcmp.gt.s32.totalorder (%p903_p4), %v1043_v47, %v535_v33  ;;  %v586_v48 = vsel (%p903_p4), %vm570_vm10, %v469_v9, 0.0 }
 0x11e   :  { %495 = vst [vmem:[#allocation5] sm:$0x1] %v494_v37  ;;  %v581_v37 = vsel (%p903_p4), %vm565_vm15, %v464_v34, 0.0  ;;  %v595_v38 = vadd.f32 (%p903_p4), %v594_v36, %v580_v35  ;;  %v534_v34 = vadd.s32 (%p903_p4), %v1036_v46, %v517_v12  ;;  %vm554_vm9 = vcmp.gt.s32.totalorder (%p903_p4), %v1043_v47, %v533_v29  ;;  %vm573_vm0 = vmand (%p903_p4), %vm556_vm13, %vm558_vm3 }
 0x11f   :  { %vm571_vm12 = vmand %vm554_vm9, %vm558_vm3  ;;  %vm557_vm15 = vcmp.gt.s32.totalorder %v1043_v47, %v536_v53  ;;  %v589_v9 = vsel %vm573_vm0, %v472_v23, 0.0 }
 0x120   :  { %v596_v45 = vadd.f32 %v595_v38, %v581_v37  ;;  %vm555_vm11 = vcmp.gt.s32.totalorder %v1043_v47, %v534_v34  ;;  %v587_v46 = vsel %vm571_vm12, %v470_v17, 0.0  ;;  %vm574_vm1 = vmand %vm557_vm15, %vm558_vm3 }
 0x121   :  { %vm572_vm14 = vmand %vm555_vm11, %vm558_vm3  ;;  %v590_v55 = vsel %vm574_vm1, %v473_v25, 0.0 }
 0x122   :  { %v597_v50 = vadd.f32 %v596_v45, %v582_v44  ;;  %v588_v0 = vsel %vm572_vm14, %v471_v19, 0.0 }
 0x124   :  { %v598_v43 = vadd.f32 %v597_v50, %v583_v49 }
 0x126   :  { %v599_v39 = vadd.f32 %v598_v43, %v584_v42 }
 0x128   :  { %v600_v56 = vadd.f32 %v599_v39, %v585_v40 }
 0x12a   :  { %v601_v52 = vadd.f32 %v600_v56, %v586_v48 }
 0x12c   :  { %v602_v57 = vadd.f32 %v601_v52, %v587_v46 }
 0x12e   :  { %v603_v54 = vadd.f32 %v602_v57, %v588_v0 }
 0x130   :  { %v604_v8 = vadd.f32 %v603_v54, %v589_v9 }
 0x132   :  { %v605_v17 = vadd.f32 %v604_v8, %v590_v55 }
 0x134   :  { %v606_v58 = vrot.slane %v605_v17, 4 }
 0x136   :  { %v607_v59 = vadd.f32 %v606_v58, %v605_v17 }
 0x138   :  { %v608_v1 = vrot.slane %v607_v59, 2 }
 0x13a   :  { %v609_v3 = vadd.f32 %v608_v1, %v607_v59 }
 0x13c   :  { %v610_v4 = vrot.slane %v609_v3, 1 }
 0x13e   :  { %v611_v16 = vadd.f32 %v610_v4, %v609_v3 }
 0x140   :  { %612 = vst [vmem:[#allocation5] sm:$0x1] %v611_v16 }
 0x141 PF:  { %s795_s0 = smov [#allocation5]  }
 0x142   :  { %s619_s1 = sshll.u32 %s795_s0, 4  ;;  %s620_s1 = int_to_ptr.vmem [resolvable:$true] %s619_s1 }
 0x143   :  { %s772_s29 = scalar_lea.vmem %s620_s1, 16  ;;  %s776_s30 = scalar_lea.vmem %s620_s1, 32 }
 0x144   :  { %p773_p5 = scmp.ne.s32.totalorder %s620_s1, %s772_s29  ;;  %p777_p6 = scmp.lt.s32.totalorder %s620_s1, %s620_s1 }
 0x145   :  { %p778_p7 = scmp.lt.s32.totalorder %s776_s30, %s772_s29 }
 0x147   :  { %p779_p8 = por %p778_p7, %p777_p6 }
 0x149   :  { %p780_p9 = pnand %p779_p8, %p773_p5 }
 0x14b   :  { %783 = shalt.err (!%p780_p9)
}
 0x14c   :  { %622 = dma.vmem_to_hbm [thread:$0]  %s620_s1, 16, %s1161_s6, [#allocation6]  }
 0x14d   :  { %792 = dma.done.wait [#allocation6], 16  }
 0x14e   :  { %793 = vsyncadd [#allocation6], 4294967280 }
 0x14f   :  { %626 = vsyncpa [#allocation6], 1 }

</bundles_post_ra>
